<compile_context>
chip_gen: v5e
topology: v5e:2x2
jax: 0.10.0
libtpu: 0.0.40
codegen_flags: <defaults>
</compile_context>

<pallas_src>
import jax
import jax.numpy as jnp
from jax.experimental import pallas as pl
from jax.experimental.pallas import tpu as pltpu


def _locked_dropout_kernel(mask_ref, x_ref, o_ref):
    """One grid step: block (1, tT, H) of x, mask row (1, 1, H) for this batch.

    Pure elementwise broadcast-multiply -> strictly HBM-bandwidth bound.
    """
    o_ref[...] = (x_ref[...] * mask_ref[...]).astype(o_ref.dtype)


def _choose_time_tile(T, H, dtype):
    """Largest time tile whose (in + out, double-buffered) footprint stays
    comfortably inside the scoped VMEM budget on v5e/v6e/v7x."""
    itemsize = jnp.dtype(dtype).itemsize
    sublane = 16 if jnp.dtype(dtype) == jnp.dtype(jnp.bfloat16) else 8
    target_bytes = 4 * 1024 * 1024          # ~4 MiB per tile buffer
    rows = (target_bytes // max(1, H * itemsize)) // sublane * sublane
    rows = max(sublane, int(rows))
    if rows >= T:
        return T                            # whole sequence fits in one tile
    return rows


def locked_dropout(x_pad, lens, *, p=0.5, key=None, training=True):
    """x_pad: (B, T, H) padded batch-first sequences; lens: (B,) lengths.

    Returns (out_pad, lens) -- the padded equivalent of the PackedSequence the
    PyTorch module would return.
    """
    if (not training) or p == 0.0:
        return x_pad, lens
    if key is None:
        key = jax.random.PRNGKey(0)

    B, T, H = x_pad.shape
    keep = 1.0 - p

    # Locked mask: one Bernoulli(1-p) draw per (batch, hidden), scaled by
    # 1/(1-p), shared across every time step.  (B, 1, H) is tiny, so generate
    # it host-side-of-the-kernel with the standard JAX PRNG.
    mask = jax.random.bernoulli(key, keep, (B, 1, H))
    mask = (mask.astype(jnp.float32) * (1.0 / keep)).astype(x_pad.dtype)

    tT = _choose_time_tile(T, H, x_pad.dtype)
    grid = (B, pl.cdiv(T, tT))

    out = pl.pallas_call(
        _locked_dropout_kernel,
        out_shape=jax.ShapeDtypeStruct((B, T, H), x_pad.dtype),
        grid_spec=pltpu.PrefetchScalarGridSpec(
            num_scalar_prefetch=0,
            grid=grid,
            in_specs=[
                pl.BlockSpec((1, 1, H), lambda b, t: (b, 0, 0)),    # mask
                pl.BlockSpec((1, tT, H), lambda b, t: (b, t, 0)),   # x
            ],
            out_specs=pl.BlockSpec((1, tT, H), lambda b, t: (b, t, 0)),
        ),
        compiler_params=pltpu.CompilerParams(
            dimension_semantics=("parallel", "parallel"),
            vmem_limit_bytes=32 * 1024 * 1024,
        ),
    )(mask, x_pad)

    # TODO(synk): pack_padded_sequence / pad_packed_sequence have no Pallas
    # equivalent; downstream consumers should use (out, lens) directly.
    return out, lens


if __name__ == "__main__":
    key = jax.random.PRNGKey(0)
    B, T, H = 2, 16, 128
    p = 0.5

    kx, kmask = jax.random.split(key)
    x = jax.random.normal(kx, (B, T, H), dtype=jnp.float32)
    lens = jnp.array([T, 11], dtype=jnp.int32)
    # Emulate pad_packed_sequence output: zero the padded tail positions.
    time_idx = jnp.arange(T)[None, :, None]
    x = jnp.where(time_idx < lens[:, None, None], x, 0.0)

    out, out_lens = locked_dropout(x, lens, p=p, key=kmask, training=True)
    out = jax.block_until_ready(out)

    # Sanity checks: shapes/dtype match, and the mask is "locked" in time --
    # for every (b, h) the ratio out/x is identical across all valid, nonzero
    # time steps and is either 0 or 1/(1-p).
    assert out.shape == x.shape and out.dtype == x.dtype
    ratio = jnp.where(jnp.abs(x) > 1e-6, out / jnp.where(x == 0, 1.0, x), jnp.nan)
    ref_row = ratio[:, 0:1, :]                       # mask inferred from t=0
    valid = (time_idx < lens[:, None, None]) & ~jnp.isnan(ratio)
    same = jnp.where(valid, jnp.abs(ratio - ref_row) < 1e-5, True)
    assert bool(jnp.all(same)), "mask is not locked across time"
    vals_ok = jnp.where(
        jnp.isnan(ref_row), True,
        (jnp.abs(ref_row) < 1e-5) | (jnp.abs(ref_row - 1.0 / (1.0 - p)) < 1e-4))
    assert bool(jnp.all(vals_ok)), "mask values not in {0, 1/(1-p)}"
    # Padded positions remain zero.
    assert bool(jnp.all(jnp.where(time_idx < lens[:, None, None], True, out == 0.0)))

    # Eval mode is identity.
    out_eval, _ = locked_dropout(x, lens, p=p, key=kmask, training=False)
    assert bool(jnp.all(out_eval == x))

    print("KERNEL_OK")
</pallas_src>

<mosaic_0001>
module attributes {stable_mosaic.version = 11 : i64} {
  func.func @_locked_dropout_kernel(%arg0: i32, %arg1: i32, %arg2: memref<1x1x128xf32, #tpu.memory_space<vmem>>, %arg3: memref<1x16x128xf32, #tpu.memory_space<vmem>>, %arg4: memref<1x16x128xf32, #tpu.memory_space<vmem>>) attributes {dimension_semantics = [#tpu.dimension_semantics<parallel>, #tpu.dimension_semantics<parallel>], iteration_bounds = array<i64: 2, 1>, scalar_prefetch = 0 : i64, scratch_operands = 0 : i64, tpu.core_type = #tpu.core_type<tc>, window_params = [{transform_indices = @transform_0, window_bounds = array<i64: 1, 1, 128>}, {transform_indices = @transform_1, window_bounds = array<i64: 1, 16, 128>}, {transform_indices = @transform_2, window_bounds = array<i64: 1, 16, 128>}]} {
    %c0 = arith.constant 0 : index
    %c0_0 = arith.constant 0 : index
    %c0_1 = arith.constant 0 : index
    %0 = vector.load %arg3[%c0, %c0_0, %c0_1] : memref<1x16x128xf32, #tpu.memory_space<vmem>>, vector<1x16x128xf32>
    %c0_2 = arith.constant 0 : index
    %c0_3 = arith.constant 0 : index
    %c0_4 = arith.constant 0 : index
    %1 = vector.load %arg2[%c0_2, %c0_3, %c0_4] : memref<1x1x128xf32, #tpu.memory_space<vmem>>, vector<1x1x128xf32>
    %2 = vector.broadcast %1 : vector<1x1x128xf32> to vector<1x16x128xf32>
    %3 = arith.mulf %0, %2 : vector<1x16x128xf32>
    %c0_5 = arith.constant 0 : index
    %c0_6 = arith.constant 0 : index
    %c0_7 = arith.constant 0 : index
    %4 = vector.load %arg4[%c0_5, %c0_6, %c0_7] : memref<1x16x128xf32, #tpu.memory_space<vmem>>, vector<1x16x128xf32>
    tpu.vector_store %arg4[%c0_5, %c0_6, %c0_7], %3 {strides = array<i32>} : memref<1x16x128xf32, #tpu.memory_space<vmem>>, vector<1x16x128xf32>,
    return
  }
  func.func @transform_0(%arg0: i32, %arg1: i32) -> (i32, i32, i32) {
    %c0_i32 = arith.constant 0 : i32
    %c0_i32_0 = arith.constant 0 : i32
    %c0_i32_1 = arith.constant 0 : i32
    return %arg0, %c0_i32, %c0_i32_0 : i32, i32, i32
  }
  func.func @transform_1(%arg0: i32, %arg1: i32) -> (i32, i32, i32) {
    %c0_i32 = arith.constant 0 : i32
    %c0_i32_0 = arith.constant 0 : i32
    return %arg0, %arg1, %c0_i32 : i32, i32, i32
  }
  func.func @transform_2(%arg0: i32, %arg1: i32) -> (i32, i32, i32) {
    %c0_i32 = arith.constant 0 : i32
    %c0_i32_0 = arith.constant 0 : i32
    return %arg0, %arg1, %c0_i32 : i32, i32, i32
  }
}

</mosaic_0001>

<bundles_post_ra>
// kernel: tpu_custom_call.1
= control target key start
LH: loop header
LB: loop body
LE: loop exit
PB: predicated region body
PF: predicated region fallthrough
CT: control target
= control target key end

     0   :  { %7 = vsyncpa [#allocation3], 0  ;;  %s753_s0 = inlined_call_operand.hbm [shape: f32[2,1,128], index: 0, kind: input, shape index: {}]   ;;  %s754_s1 = inlined_call_operand.hbm [shape: f32[2,16,128], index: 1, kind: input, shape index: {}]   ;;  %s755_s2 = inlined_call_operand.hbm [shape: f32[2,16,128], index: 2, kind: output, shape index: {}]  }
   0x1   :  { %9 = vsyncpa [#allocation3 + $0x1], 0 }
   0x2   :  { %10 = vsyncpa [#allocation6], 0 }
   0x3   :  { %12 = vsyncpa [#allocation6 + $0x1], 0 }
   0x4   :  { %13 = vsyncpa [#allocation4], 0 }
   0x5   :  { %15 = vsyncpa [#allocation4 + $0x1], 0  ;;  %s609_s9 = smov 0   ;;  %s611_s10 = smov 0  }
   0x6   :  { %s613_s11 = smov 0   ;;  %s615_s12 = smov 0  }
   0x7   :  { %s617_s13 = smov 0   ;;  %s619_s14 = smov 0  }
   0x8 LB: > { %s353_s15 = sadd.s32 4294967295, %s588_s14   ;;  %s354_s16 = sadd.s32 4294967294, %s588_s14   ;;  %s588_s14 = sphi %s619_s14, %s21_s14   ;;  %s584_s13 = sphi %s617_s13, %s765_s13   ;;  %s580_s12 = sphi %s615_s12, %s764_s12   ;;  %s576_s11 = sphi %s613_s11, %s763_s11   ;;  %s572_s10 = sphi %s611_s10, %s762_s10   ;;  %s568_s9 = sphi %s609_s9, %s761_s9  }
   0x9   : > { %s33_s17 = sadd.s32 1, %s584_s13  ;;  %s40_s18 = sadd.s32 1, %s576_s11 }
   0xa   : > { %p35_p0 = scmp.ge.s32.totalorder %s33_s17, 2  ;;  %p47_p1 = scmp.ne.s32.totalorder %s576_s11, %s572_s10 }
   0xb   : > { %p48_p2 = scmp.eq.s32.totalorder %s588_s14, 0  ;;  %p53_p3 = scmp.ne.s32.totalorder %s572_s10, %s568_s9 }
   0xc   : > { %s767_s17 = smov (%p35_p0, %s33_s17), 0  ;;  %p54_p5 = scmp.eq.s32.totalorder %s353_s15, 0 }
   0xd   : > { %p650_p4 = por %p48_p2, %p47_p1  ;;  %s37_s20 = ssub.s32 %s584_s13, %s767_s17 }
   0xe   : > { %p107_p6 = scmp.eq.s32.totalorder %s353_s15, 1  ;;  %p38_p7 = scmp.eq.s32.totalorder %s37_s20, 0 }
   0xf   : > { %p656_p8 = por %p54_p5, %p53_p3  ;;  %p113_p10 = scmp.eq.s32.totalorder %s354_s16, 1 }
  0x10   : > { %p660_p9 = por %p107_p6, %p47_p1  ;;  %p356_p12 = scmp.ge.s32.totalorder %s588_s14, 2 }
  0x11   : > { %s665_s23 = scalar_select %p38_p7, %s576_s11, %s40_s18  }
  0x12   : > { %p667_p11 = por %p113_p10, %p53_p3  ;;  %p387_p13 = scmp.lt.s32.totalorder %s588_s14, 2 }
  0x13   : > { %s674_s25 = sand.u32 1, %s576_s11   ;;  %s139_s28 = scalar_lea.hbm %s753_s0, %s584_s13 }
  0x14   : > { %s136_s29 = scalar_lea.vmem [#allocation2], %s674_s25  ;;  %s141_s3 = sshll.u32 %s139_s28, 4  ;;  %s142_s3 = int_to_ptr.hbm [resolvable:$true] %s141_s3 }
  0x15   : > { %s143_s30 = sshll.u32 %s136_s29, 4  ;;  %p683_p0 = pnand %p387_p13, %p650_p4  ;;  %s144_s30 = int_to_ptr.vmem [resolvable:$true] %s143_s30 }
  0x16   : > { %p360_p1 = scmp.ge.s32.totalorder %s588_s14, 1  ;;  %p172_p2 = scmp.lt.s32.totalorder %s588_s14, 3 }
  0x17   : > { %s134_s5 = scalar_lea.sflag [#allocation3], %s674_s25  ;;  %s357_s6 = sshll.u32 %s674_s25, 4 }
  0x18   : > { %379 = dma.hbm_to_vmem [thread:$0]  (!%p683_p0), %s142_s3, 16, %s144_s30, %s134_s5  }
  0x19   : > { %p173_p3 = pnand %p360_p1, %p172_p2  ;;  %s368_s7 = sshll.u32 %s584_s13, 4 }
  0x1a   : > { %s161_s16 = scalar_lea.hbm %s754_s1, %s368_s7  ;;  %s154_s18 = scalar_lea.vmem [#allocation5], %s357_s6 }
  0x1b   : > { %s164_s19 = sshll.u32 %s154_s18, 4  ;;  %s162_s20 = sshll.u32 %s161_s16, 4  ;;  %s165_s19 = int_to_ptr.vmem [resolvable:$true] %s164_s19  ;;  %s163_s20 = int_to_ptr.hbm [resolvable:$true] %s162_s20 }
  0x1c   : > { %s151_s26 = scalar_lea.sflag [#allocation6], %s674_s25  ;;  %s590_s27 = smov 128  }
  0x1d   : > { %s591_s28 = smov 8   ;;  %176 = sbr.rel (%p173_p3) target bundleno = 54 (0x36), region = 28 }
  0x1e   : > { %382 = dma.hbm_to_vmem [thread:$0]  (!%p683_p0), %s163_s20, 256, %s165_s19, %s151_s26, %s590_s27, %s590_s27, %s591_s28  }
  0x1f   : > { %s701_s29 = sand.u32 (!%p173_p3), 1, %s572_s10  }
  0x20   : > { %s179_s30 = scalar_lea.sflag (!%p173_p3), [#allocation3], %s701_s29  ;;  %s181_s3 = scalar_lea.vmem (!%p173_p3), [#allocation2], %s701_s29 }
  0x22   : > { %555 = dma.done.wait (%p656_p8), %s179_s30, 16  }
  0x23   : > { %557 = vsyncadd (%p656_p8), %s179_s30, 4294967280  ;;  %s361_s25 = sshll.u32 %s701_s29, 4  ;;  %s188_s4 = scalar_lea.sflag [#allocation6], %s701_s29 }
  0x24   : > { %s191_s5 = scalar_lea.vmem [#allocation5], %s361_s25 }
  0x25   : > { %559 = dma.done.wait (%p656_p8), %s188_s4, 256  }
  0x26   : > { %561 = vsyncadd (%p656_p8), %s188_s4, 4294967040  ;;  %s369_s6 = sshll.u32 %s580_s12, 4  ;;  %s216_s16 = scalar_lea.vmem [#allocation7], %s361_s25  ;;  %v219_v0 = vld [vmem:[%s191_s5] sm:$0xff]  ;;  %v441_v1 = vld [vmem:[%s181_s3] ss:$0 sm:$0xff] }
  0x27   : > { %s243_s15 = scalar_lea.hbm %s755_s2, %s369_s6  ;;  %s244_s18 = sshll.u32 %s216_s16, 4  ;;  %v220_v2 = vld [vmem:[%s191_s5 + $0x8] sm:$0xff]  ;;  %v225_v3 = vmul.f32 %v441_v1, %v219_v0  ;;  %s245_s18 = int_to_ptr.vmem [resolvable:$true] %s244_s18 }
  0x28   : > { %s246_s19 = sshll.u32 %s243_s15, 4  ;;  %v226_v4 = vmul.f32 %v441_v1, %v220_v2  ;;  %s230_s21 = scalar_lea.sflag [#allocation4], %s701_s29  ;;  %s247_s19 = int_to_ptr.hbm [resolvable:$true] %s246_s19 }
  0x29   : > { %227 = vst [vmem:[%s216_s16] sm:$0xff] %v225_v3  ;;  %s516_s20 = sshra.s32 %s247_s19, 4  ;;  %s522_s28 = scalar_lea.hbm %s755_s2, 32  ;;  %s517_s20 = int_to_ptr.hbm [resolvable:$true] %s516_s20 }
  0x2a   : > { %228 = vst [vmem:[%s216_s16 + $0x8] sm:$0xff] %v226_v4  ;;  %s518_s12 = scalar_lea.hbm %s517_s20, 16  ;;  %p523_p7 = scmp.lt.s32.totalorder %s517_s20, %s755_s2 }
  0x2b   : > { %p519_p4 = scmp.ne.s32.totalorder %s517_s20, %s518_s12  ;;  %p524_p8 = scmp.lt.s32.totalorder %s522_s28, %s518_s12 }
  0x2d   : > { %p520_p5 = pnand %p519_p4, %p660_p9  ;;  %p525_p10 = por %p524_p8, %p523_p7 }
  0x2f   : > { %p521_p6 = pneg %p520_p5 }
  0x31   : > { %p526_p13 = pnand %p525_p10, %p521_p6 }
  0x33   : > { %529 = shalt.err (!%p526_p13)
}
  0x34   : > { %s592_s29 = smov 128   ;;  %s593_s25 = smov 8  }
  0x35   : > { %374 = dma.vmem_to_hbm [thread:$0]  (%p660_p9), %s245_s18, 256, %s247_s19, %s230_s21, %s592_s29, %s592_s29, %s593_s25  }
  0x36 PF: > { %s261_s4 = sand.u32 1, %s568_s9   ;;  %p384_p0 = pnand %p356_p12, %p667_p11 }
  0x37   : > { %s262_s5 = scalar_lea.sflag [#allocation4], %s261_s4 }
  0x38   : > { %p385_p1 = pneg %p384_p0 }
  0x3a   : > { %563 = dma.done.wait (%p385_p1), %s262_s5, 256  }
  0x3b   : > { %565 = vsyncadd (%p385_p1), %s262_s5, 4294967040  ;;  %s21_s14 = sadd.s32 1, %s588_s14   ;;  %s761_s9 = smov %s572_s10 }
  0x3c   : > { %p18_p2 = scmp.ge.s32.totalorder %s21_s14, 4   ;;  %s762_s10 = smov %s576_s11 }
  0x3d   : > { %s763_s11 = smov %s665_s23  ;;  %s764_s12 = smov %s584_s13 }
  0x3e   : > { %s765_s13 = smov %s767_s17  ;;  %20 = sbr.rel (!%p18_p2) target bundleno = 8 (0x8), region = 86 }
  0x43   :  { %268 = vsyncpa [#allocation3], 1 }
  0x44   :  { %270 = vsyncpa [#allocation3 + $0x1], 1 }
  0x45   :  { %271 = vsyncpa [#allocation6], 1 }
  0x46   :  { %273 = vsyncpa [#allocation6 + $0x1], 1 }
  0x47   :  { %274 = vsyncpa [#allocation4], 1 }
  0x48   :  { %276 = vsyncpa [#allocation4 + $0x1], 1 }

</bundles_post_ra>
